<compile_context>
chip_gen: v7x
topology: tpu7x:2x2x1
jax: 0.10.0
libtpu: 0.0.40
codegen_flags: <defaults>
</compile_context>

<pallas_src>
import math

import jax
import jax.numpy as jnp
import numpy as np
from jax.experimental import pallas as pl
from jax.experimental.pallas import tpu as pltpu

# Problem sizes (small, consistent with the module: Blur(c1=16, c2=32))
N = 2                    # batch
C1 = 16                  # input channels (divisible by 4 for pixel_shuffle(2))
H = W = 8                # input spatial
R = 2                    # pixel_shuffle upscale factor
CIN = C1 // (R * R)      # conv input channels  = 4
C2 = 32                  # conv output channels
M = N * H * W            # 128 pre-shuffle pixels
LANES = R * R * M        # 512 lane-dense columns after sub-pixel regroup
EPS = 1e-5               # BatchNorm eps


def blur_conv_kernel(x_ref, w_ref, b_ref, o_ref):
    """Fused pixel_shuffle + 1x1 conv + BN(eval) + SiLU as one MXU matmul.

    x_ref: (CIN, R*R*M) bf16  activation regrouped by sub-pixel (lane-dense)
    w_ref: (C2, CIN)    bf16  BN-scaled 1x1 conv weight
    b_ref: (C2, 1)      f32   BN shift (per output channel)
    o_ref: (C2, R*R*M)  f32   rows = out-channel o, cols = (s, n, h, w)
    """
    acc = jnp.dot(w_ref[...], x_ref[...],
                  preferred_element_type=jnp.float32) + b_ref[...]
    # SiLU: x * sigmoid(x) (sigmoid lowers to the EUP transcendental path)
    o_ref[...] = (acc * jax.nn.sigmoid(acc)).astype(o_ref.dtype)


def fuse_blur_params(conv_w, bn_gamma, bn_beta, bn_mean, bn_var):
    """One-time weight fold (hoisted out of the per-forward path).

    Folds eval-mode BatchNorm into the 1x1 conv weight and casts the matmul
    operand to bf16.  Returns (w_fused (C2, CIN) bf16, b_fused (C2, 1) f32).
    """
    # TODO(synk): BatchNorm2d training-mode (batch statistics) path is not
    # implemented; only eval-mode running statistics are folded.
    inv_std = 1.0 / jnp.sqrt(bn_var + EPS)
    scale = bn_gamma * inv_std                            # (C2,)
    shift = bn_beta - bn_mean * scale                     # (C2,)
    w_fused = (conv_w[:, :, 0, 0] * scale[:, None]).astype(jnp.bfloat16)
    b_fused = shift.reshape(-1, 1).astype(jnp.float32)
    return w_fused, b_fused


@jax.jit
def blur_forward(x, w_fused, b_fused):
    """x: (N, C1, H, W) f32, pre-fused params -> (N, C2, 2H, 2W) f32."""
    n, c1, h, w = x.shape
    cin = c1 // (R * R)
    c2 = w_fused.shape[0]
    m = n * h * w

    # pixel_shuffle fold: y[n, c, 2h+a, 2w+b] = x[n, 4c + 2a + b, h, w].
    # Channel index is 4c + s, so a single reshape regroups by sub-pixel:
    #   x3[c, s*m + (n*h*w flat)] = x[n, 4c+s, h, w]            (CIN, 4*M)
    x3 = jnp.transpose(x, (1, 0, 2, 3)).reshape(cin, R * R * m)
    x3 = x3.astype(jnp.bfloat16)

    out3 = pl.pallas_call(
        blur_conv_kernel,
        out_shape=jax.ShapeDtypeStruct((c2, R * R * m), jnp.float32),
        in_specs=[
            pl.BlockSpec(memory_space=pltpu.MemorySpace.VMEM),  # x3
            pl.BlockSpec(memory_space=pltpu.MemorySpace.VMEM),  # w_fused
            pl.BlockSpec(memory_space=pltpu.MemorySpace.VMEM),  # b_fused
        ],
        out_specs=pl.BlockSpec(memory_space=pltpu.MemorySpace.VMEM),
    )(x3, w_fused, b_fused)                                     # (C2, 4*M)

    # Un-fold the sub-pixel interleave back to NCHW (layout plumbing kept in
    # XLA — lane-dense kernel stores, cheap transpose on a 64 KiB tensor).
    out = out3.reshape(c2, R, R, n, h, w)
    out = jnp.transpose(out, (3, 0, 4, 1, 5, 2)).reshape(n, c2, h * R, w * R)
    return out


def reference_forward(x, conv_w, gamma, beta, mean, var):
    """Pure-JAX f32 reference of the PyTorch forward (eval-mode BatchNorm)."""
    n, c1, h, w = x.shape
    # F.pixel_shuffle(x, 2)
    y = x.reshape(n, c1 // 4, R, R, h, w)
    y = jnp.transpose(y, (0, 1, 4, 2, 5, 3)).reshape(n, c1 // 4, h * R, w * R)
    # 1x1 conv, no bias
    z = jnp.einsum("oc,nchw->nohw", conv_w[:, :, 0, 0], y)
    # BatchNorm2d (eval)
    inv_std = 1.0 / jnp.sqrt(var + EPS)
    z = (z - mean[None, :, None, None]) * (gamma * inv_std)[None, :, None, None] \
        + beta[None, :, None, None]
    # SiLU
    return z * jax.nn.sigmoid(z)


if __name__ == "__main__":
    key = jax.random.PRNGKey(0)
    kx, kw, kg, kb, km, kv = jax.random.split(key, 6)

    x = jax.random.normal(kx, (N, C1, H, W), jnp.float32)
    conv_w = jax.random.normal(kw, (C2, CIN, 1, 1), jnp.float32) / math.sqrt(CIN)
    bn_gamma = 1.0 + 0.1 * jax.random.normal(kg, (C2,), jnp.float32)
    bn_beta = 0.1 * jax.random.normal(kb, (C2,), jnp.float32)
    bn_mean = 0.1 * jax.random.normal(km, (C2,), jnp.float32)
    bn_var = jnp.abs(jax.random.normal(kv, (C2,), jnp.float32)) + 0.5

    # Weight fold runs once (not per forward call).
    w_fused, b_fused = fuse_blur_params(conv_w, bn_gamma, bn_beta,
                                        bn_mean, bn_var)
    w_fused, b_fused = jax.block_until_ready((w_fused, b_fused))

    out = blur_forward(x, w_fused, b_fused)
    out = jax.block_until_ready(out)

    ref = reference_forward(x, conv_w, bn_gamma, bn_beta, bn_mean, bn_var)
    # bf16 matmul operands -> loosen tolerances vs the f32 reference.
    np.testing.assert_allclose(np.asarray(out), np.asarray(ref),
                               rtol=5e-2, atol=5e-2)
    print("KERNEL_OK")
</pallas_src>

<mosaic_0001>
module attributes {stable_mosaic.version = 11 : i64} {
  func.func @blur_conv_kernel(%arg0: memref<4x512xbf16, #tpu.memory_space<vmem>>, %arg1: memref<32x4xbf16, #tpu.memory_space<vmem>>, %arg2: memref<32x1xf32, #tpu.memory_space<vmem>>, %arg3: memref<32x512xf32, #tpu.memory_space<vmem>>) attributes {dimension_semantics = [], scalar_prefetch = 0 : i64, scratch_operands = 0 : i64, tpu.core_type = #tpu.core_type<tc>} {
    %c0 = arith.constant 0 : index
    %c0_0 = arith.constant 0 : index
    %0 = vector.load %arg1[%c0, %c0_0] : memref<32x4xbf16, #tpu.memory_space<vmem>>, vector<32x4xbf16>
    %c0_1 = arith.constant 0 : index
    %c0_2 = arith.constant 0 : index
    %1 = vector.load %arg0[%c0_1, %c0_2] : memref<4x512xbf16, #tpu.memory_space<vmem>>, vector<4x512xbf16>
    %cst = arith.constant dense<0.000000e+00> : vector<32x512xf32>
    %2 = tpu.matmul %0, %1, %cst {dimension_numbers = #tpu.dot_dimension_numbers<[1], [0], [0], [1], [0, 0, 1, 1], [], []>} : vector<32x4xbf16>, vector<4x512xbf16>, vector<32x512xf32> -> vector<32x512xf32>
    %c0_3 = arith.constant 0 : index
    %c0_4 = arith.constant 0 : index
    %3 = vector.load %arg2[%c0_3, %c0_4] : memref<32x1xf32, #tpu.memory_space<vmem>>, vector<32x1xf32>
    %4 = vector.broadcast %3 : vector<32x1xf32> to vector<32x512xf32>
    %5 = arith.addf %2, %4 : vector<32x512xf32>
    %6 = arith.negf %5 : vector<32x512xf32>
    %7 = math.exp %6 : vector<32x512xf32>
    %cst_5 = arith.constant 1.000000e+00 : f32
    %8 = vector.broadcast %cst_5 : f32 to vector<32x512xf32>
    %9 = arith.addf %8, %7 : vector<32x512xf32>
    %10 = arith.divf %8, %9 : vector<32x512xf32>
    %11 = arith.mulf %5, %10 : vector<32x512xf32>
    %c0_6 = arith.constant 0 : index
    %c0_7 = arith.constant 0 : index
    %12 = vector.load %arg3[%c0_6, %c0_7] : memref<32x512xf32, #tpu.memory_space<vmem>>, vector<32x512xf32>
    tpu.vector_store %arg3[%c0_6, %c0_7], %11 {strides = array<i32>} : memref<32x512xf32, #tpu.memory_space<vmem>>, vector<32x512xf32>,
    return
  }
}

</mosaic_0001>

<bundles_post_ra>
// kernel: blur_forward.1
= control target key start
LH: loop header
LB: loop body
LE: loop exit
PB: predicated region body
PF: predicated region fallthrough
CT: control target
= control target key end

     0   :  { %v59_v0 = vlaneseq  ;;  %v425_v2 = vmov 1983009808   ;;  %v426_v4 = vmov 0   ;;  %vm79_vm0 = vcmask 1041408   ;;  %s580_s0 = inlined_call_operand.vmem [shape: bf16[4,512], index: 0, kind: input, shape index: {}]   ;;  %s581_s1 = inlined_call_operand.vmem [shape: bf16[32,4], index: 1, kind: input, shape index: {}]   ;;  %s582_s2 = inlined_call_operand.vmem [shape: f32[32,1], index: 2, kind: input, shape index: {}]   ;;  %s583_s3 = inlined_call_operand.vmem [shape: f32[32,512], index: 3, kind: output, shape index: {}]  }
   0x1   :  { %v19_v1 = vld [vmem:[%s580_s0] sm:$0xff]  ;;  %v57_v3 = vunpack.c.l.s4 %v425_v2  ;;  %124 = vmatprep.mubr.bf16.mxu0 %v426_v4  ;;  %177 = vmatprep.mubr.bf16.mxu1 %v426_v4  ;;  %v22_v9 = vld [vmem:[%s582_s2 + $0x10] sm:$0xff]  ;;  %v21_v11 = vld [vmem:[%s582_s2 + $0x8] sm:$0xff]  ;;  %vm72_vm1 = vcmask 31744  }
   0x2   :  { %v60_v5 = vshrl.u32 %v59_v0, 7  ;;  %356 = vset.pattern.permute.xlu0 %v426_v4  ;;  %357 = vset.pattern.permute.xlu1 %v426_v4  ;;  %v55_v7 = vcombine.high %v19_v1, %v19_v1  ;;  %v20_v8 = vld [vmem:[%s582_s2] sm:$0xff]  ;;  %v23_v12 = vld [vmem:[%s582_s2 + $0x18] sm:$0xff]  ;;  %v360_v20 = vld [vmem:[%s581_s1 + $0x8] sm:$0xff]  }
   0x3   :  { %v58_v6 = vunpack.c.0.s8 %v57_v3  ;;  %26 = vperm.xlu0 %356, %v20_v8   ;;  %36 = vperm.xlu1 %357, %v22_v9   ;;  %v359_v19 = vld [vmem:[%s581_s1] sm:$0xff]  }
   0x5   :  { %v61_v10 = vsub.s32 %v58_v6, %v60_v5 }
   0x7   :  { %v62_v13 = vrot.slane %v19_v1, %v61_v10  ;;  %v69_v14 = vrot.slane %v55_v7, %v61_v10  ;;  %31 = vperm.xlu0 %356, %v21_v11   ;;  %41 = vperm.xlu1 %357, %v23_v12  }
   0x9   :  { %v70_v15 = vcombine.high %v62_v13, %v62_v13  ;;  %v71_v16 = vcombine.high %v69_v14, %v69_v14  ;;  %v81_v17 = vsel %vm79_vm0, %v62_v13, 0  ;;  %v87_v18 = vsel %vm79_vm0, %v69_v14, 0 }
   0xb   :  { %332 = vmatprep.subr.msk.bf16.mxu0 %vm79_vm0, %v70_v15  ;;  %335 = vmatprep.subr.msk.bf16.mxu1 %vm79_vm0, %v71_v16 }
   0xc   :  { %93 = vmatpush1.bf16.msra.mxu0 %v81_v17  ;;  %146 = vmatpush1.bf16.msra.mxu1 %v87_v18 }
   0xf   :  { %333 = vmatmul.mubr.msk.bf16.vlgmr.msra.gmra.mrb[0].mxu0 %vm72_vm1, %v359_v19  ;;  %336 = vmatmul.mubr.msk.bf16.vlgmr.msra.gmra.mrb[0].mxu1 %vm72_vm1, %v359_v19 }
  0x10   :  { %134 = vmatprep.mubr.bf16.mxu0 %v426_v4  ;;  %187 = vmatprep.mubr.bf16.mxu1 %v426_v4 }
  0x17   :  { %334 = vmatmul.mubr.msk.bf16.gmra.mrb[4].mxu0 %vm72_vm1, %v360_v20  ;;  %337 = vmatmul.mubr.msk.bf16.gmra.mrb[4].mxu1 %vm72_vm1, %v360_v20 }
  0x82   :  { %v27_v21 = vpop.permute.xlu0 %26  ;;  %v37_v23 = vpop.permute.xlu1 %36 }
  0x86   :  { %v32_v22 = vpop.permute.xlu0 %31  ;;  %v42_v47 = vpop.permute.xlu1 %41 }
  0xe2   :  { %v126_v24 = vpop.f32.mrb[0].mxu0  ;;  %v179_v25 = vpop.f32.mrb[0].mxu1 }
  0xe3   :  { %v468_v26 = vadd.f32 %v126_v24, %v27_v21  ;;  %v470_v27 = vadd.f32 %v179_v25, %v27_v21  ;;  %v128_v28 = vpop.f32.mrb[1].mxu0  ;;  %v181_v29 = vpop.f32.mrb[1].mxu1 }
  0xe4   :  { %v472_v30 = vadd.f32 %v128_v28, %v27_v21  ;;  %v474_v31 = vadd.f32 %v181_v29, %v27_v21  ;;  %v130_v32 = vpop.f32.mrb[2].mxu0  ;;  %v183_v33 = vpop.f32.mrb[2].mxu1 }
  0xe5   :  { %v338_v34 = vmul.f32 -1.442695, %v468_v26  ;;  %v340_v35 = vmul.f32 -1.442695, %v470_v27  ;;  %v478_v36 = vadd.f32 %v130_v32, %v32_v22  ;;  %v480_v37 = vadd.f32 %v183_v33, %v32_v22  ;;  %v132_v38 = vpop.f32.mrb[3].mxu0  ;;  %v185_v39 = vpop.f32.mrb[3].mxu1 }
  0xe6   :  { %v339_v40 = vmul.f32 -1.442695, %v472_v30  ;;  %v341_v41 = vmul.f32 -1.442695, %v474_v31  ;;  %v484_v42 = vadd.f32 %v132_v38, %v32_v22  ;;  %v486_v43 = vadd.f32 %v185_v39, %v32_v22 }
  0xe7   :  { %361 = vpow2.f32 %v338_v34  ;;  %v342_v44 = vmul.f32 -1.442695, %v478_v36  ;;  %v344_v45 = vmul.f32 -1.442695, %v480_v37 }
  0xe8   :  { %363 = vpow2.f32 %v340_v35  ;;  %v343_v46 = vmul.f32 -1.442695, %v484_v42  ;;  %v345_v48 = vmul.f32 -1.442695, %v486_v43 }
  0xe9   :  { %365 = vpow2.f32 %v339_v40 }
  0xea   :  { %367 = vpow2.f32 %v341_v41  ;;  %v136_v49 = vpop.f32.mrb[4].mxu0  ;;  %v189_v50 = vpop.f32.mrb[4].mxu1 }
  0xeb   :  { %369 = vpow2.f32 %v342_v44  ;;  %v492_v51 = vadd.f32 %v136_v49, %v37_v23  ;;  %v494_v52 = vadd.f32 %v189_v50, %v37_v23  ;;  %v138_v53 = vpop.f32.mrb[5].mxu0  ;;  %v191_v54 = vpop.f32.mrb[5].mxu1 }
  0xec   :  { %371 = vpow2.f32 %v344_v45  ;;  %v496_v55 = vadd.f32 %v138_v53, %v37_v23  ;;  %v498_v56 = vadd.f32 %v191_v54, %v37_v23  ;;  %v140_v57 = vpop.f32.mrb[6].mxu0  ;;  %v193_v58 = vpop.f32.mrb[6].mxu1 }
  0xed   :  { %373 = vpow2.f32 %v343_v46  ;;  %v346_v59 = vmul.f32 -1.442695, %v492_v51  ;;  %v348_v60 = vmul.f32 -1.442695, %v494_v52  ;;  %v502_v61 = vadd.f32 %v140_v57, %v42_v47  ;;  %v142_v62 = vpop.f32.mrb[7].mxu0  ;;  %v195_v63 = vpop.f32.mrb[7].mxu1 }
  0xee   :  { %375 = vpow2.f32 %v345_v48  ;;  %v347_v0 = vmul.f32 -1.442695, %v496_v55  ;;  %v349_v1 = vmul.f32 -1.442695, %v498_v56  ;;  %v507_v20 = vadd.f32 %v193_v58, %v42_v47 }
  0xef   :  { %377 = vpow2.f32 %v346_v59  ;;  %v350_v2 = vmul.f32 -1.442695, %v502_v61  ;;  %v509_v23 = vadd.f32 %v142_v62, %v42_v47  ;;  %v511_v28 = vadd.f32 %v195_v63, %v42_v47 }
  0xf0   :  { %379 = vpow2.f32 %v348_v60  ;;  %v352_v35 = vmul.f32 -1.442695, %v507_v20 }
  0xf1   :  { %v362_v3 = vpop.eup %361  ;;  %381 = vpow2.f32 %v347_v0  ;;  %v351_v40 = vmul.f32 -1.442695, %v509_v23  ;;  %v353_v45 = vmul.f32 -1.442695, %v511_v28 }
  0xf2   :  { %v364_v4 = vpop.eup %363  ;;  %v246_v5 = vadd.f32 1.0, %v362_v3  ;;  %383 = vpow2.f32 %v349_v1 }
  0xf3   :  { %v366_v6 = vpop.eup %365  ;;  %v248_v7 = vadd.f32 1.0, %v364_v4  ;;  %385 = vpow2.f32 %v350_v2 }
  0xf4   :  { %v368_v8 = vpop.eup %367  ;;  %387 = vrcp.f32 %v246_v5  ;;  %v247_v9 = vadd.f32 1.0, %v366_v6 }
  0xf5   :  { %v370_v10 = vpop.eup %369  ;;  %389 = vrcp.f32 %v248_v7  ;;  %v249_v11 = vadd.f32 1.0, %v368_v8 }
  0xf6   :  { %v372_v12 = vpop.eup %371  ;;  %391 = vrcp.f32 %v247_v9  ;;  %v250_v13 = vadd.f32 1.0, %v370_v10 }
  0xf7   :  { %v374_v14 = vpop.eup %373  ;;  %393 = vrcp.f32 %v249_v11  ;;  %v252_v15 = vadd.f32 1.0, %v372_v12 }
  0xf8   :  { %v376_v16 = vpop.eup %375  ;;  %395 = vrcp.f32 %v250_v13  ;;  %v251_v17 = vadd.f32 1.0, %v374_v14 }
  0xf9   :  { %v378_v18 = vpop.eup %377  ;;  %397 = vrcp.f32 %v252_v15  ;;  %v253_v19 = vadd.f32 1.0, %v376_v16 }
  0xfa   :  { %v380_v21 = vpop.eup %379  ;;  %399 = vrcp.f32 %v251_v17  ;;  %v254_v22 = vadd.f32 1.0, %v378_v18 }
  0xfb   :  { %v382_v24 = vpop.eup %381  ;;  %401 = vrcp.f32 %v253_v19  ;;  %v256_v25 = vadd.f32 1.0, %v380_v21 }
  0xfc   :  { %v384_v29 = vpop.eup %383  ;;  %403 = vrcp.f32 %v254_v22  ;;  %v255_v32 = vadd.f32 1.0, %v382_v24 }
  0xfd   :  { %v386_v33 = vpop.eup %385  ;;  %405 = vrcp.f32 %v256_v25  ;;  %v257_v34 = vadd.f32 1.0, %v384_v29 }
  0xfe   :  { %v388_v38 = vpop.eup %387  ;;  %407 = vrcp.f32 %v255_v32  ;;  %v258_v39 = vadd.f32 1.0, %v386_v33 }
  0xff   :  { %v390_v41 = vpop.eup %389  ;;  %v294_v44 = vmul.f32 %v388_v38, %v468_v26  ;;  %409 = vrcp.f32 %v257_v34 }
 0x100   :  { %v392_v46 = vpop.eup %391  ;;  %v296_v47 = vmul.f32 %v390_v41, %v470_v27  ;;  %411 = vrcp.f32 %v258_v39 }
 0x101   :  { %v394_v48 = vpop.eup %393  ;;  %310 = vst [vmem:[%s583_s3] sm:$0xff] %v294_v44  ;;  %v295_v49 = vmul.f32 %v392_v46, %v472_v30  ;;  %413 = vpow2.f32 %v352_v35 }
 0x102   :  { %v396_v50 = vpop.eup %395  ;;  %312 = vst [vmem:[%s583_s3 + $0x10] sm:$0xff] %v296_v47  ;;  %v297_v26 = vmul.f32 %v394_v48, %v474_v31  ;;  %415 = vpow2.f32 %v351_v40 }
 0x103   :  { %v398_v53 = vpop.eup %397  ;;  %311 = vst [vmem:[%s583_s3 + $0x8] sm:$0xff] %v295_v49  ;;  %v298_v27 = vmul.f32 %v396_v50, %v478_v36  ;;  %417 = vpow2.f32 %v353_v45 }
 0x104   :  { %v400_v54 = vpop.eup %399  ;;  %313 = vst [vmem:[%s583_s3 + $0x18] sm:$0xff] %v297_v26  ;;  %v300_v30 = vmul.f32 %v398_v53, %v480_v37 }
 0x105   :  { %v402_v57 = vpop.eup %401  ;;  %314 = vst [vmem:[%s583_s3 + $0x20] sm:$0xff] %v298_v27  ;;  %v299_v31 = vmul.f32 %v400_v54, %v484_v42 }
 0x106   :  { %v404_v58 = vpop.eup %403  ;;  %316 = vst [vmem:[%s583_s3 + $0x30] sm:$0xff] %v300_v30  ;;  %v301_v36 = vmul.f32 %v402_v57, %v486_v43 }
 0x107   :  { %v406_v59 = vpop.eup %405  ;;  %315 = vst [vmem:[%s583_s3 + $0x28] sm:$0xff] %v299_v31  ;;  %v302_v37 = vmul.f32 %v404_v58, %v492_v51 }
 0x108   :  { %v408_v60 = vpop.eup %407  ;;  %317 = vst [vmem:[%s583_s3 + $0x38] sm:$0xff] %v301_v36  ;;  %v304_v42 = vmul.f32 %v406_v59, %v494_v52 }
 0x109   :  { %v410_v62 = vpop.eup %409  ;;  %318 = vst [vmem:[%s583_s3 + $0x40] sm:$0xff] %v302_v37  ;;  %v303_v43 = vmul.f32 %v408_v60, %v496_v55 }
 0x10a   :  { %v412_v63 = vpop.eup %411  ;;  %320 = vst [vmem:[%s583_s3 + $0x50] sm:$0xff] %v304_v42  ;;  %v305_v51 = vmul.f32 %v410_v62, %v498_v56 }
 0x10b   :  { %v414_v0 = vpop.eup %413  ;;  %319 = vst [vmem:[%s583_s3 + $0x48] sm:$0xff] %v303_v43  ;;  %v306_v52 = vmul.f32 %v412_v63, %v502_v61 }
 0x10c   :  { %v416_v1 = vpop.eup %415  ;;  %321 = vst [vmem:[%s583_s3 + $0x58] sm:$0xff] %v305_v51  ;;  %v260_v55 = vadd.f32 1.0, %v414_v0 }
 0x10d   :  { %v418_v2 = vpop.eup %417  ;;  %322 = vst [vmem:[%s583_s3 + $0x60] sm:$0xff] %v306_v52  ;;  %v259_v3 = vadd.f32 1.0, %v416_v1 }
 0x10e   :  { %419 = vrcp.f32 %v260_v55  ;;  %v261_v56 = vadd.f32 1.0, %v418_v2 }
 0x10f   :  { %421 = vrcp.f32 %v259_v3 }
 0x110   :  { %423 = vrcp.f32 %v261_v56 }
 0x118   :  { %v420_v4 = vpop.eup %419 }
 0x119   :  { %v422_v5 = vpop.eup %421  ;;  %v308_v61 = vmul.f32 %v420_v4, %v507_v20 }
 0x11a   :  { %v424_v6 = vpop.eup %423  ;;  %v307_v7 = vmul.f32 %v422_v5, %v509_v23 }
 0x11b   :  { %324 = vst [vmem:[%s583_s3 + $0x70] sm:$0xff] %v308_v61  ;;  %v309_v8 = vmul.f32 %v424_v6, %v511_v28 }
 0x11c   :  { %323 = vst [vmem:[%s583_s3 + $0x68] sm:$0xff] %v307_v7 }
 0x11d   :  { %325 = vst [vmem:[%s583_s3 + $0x78] sm:$0xff] %v309_v8 }

</bundles_post_ra>
